<compile_context>
chip_gen: v6e
topology: v6e:2x2x1
jax: 0.10.0
libtpu: 0.0.40
codegen_flags: <defaults>
</compile_context>

<pallas_src>
import functools

import jax
import jax.numpy as jnp
from jax.experimental import pallas as pl
from jax.experimental.pallas import tpu as pltpu

LANES = 128            # vreg lane width
MAX_TILE_ROWS = 2048   # 2048 x 128 x 4B = 1 MiB per buffer


def _round_up(x, m):
    return ((x + m - 1) // m) * m


def clip_boxes_kernel(x_ref, o_ref, *, width, height):
    # x_ref / o_ref: VMEM (tile_rows, 128) tile of the flattened box buffer.
    x = x_ref[...]
    dt = x.dtype

    # Bounds built at (1, 128); broadcast over the sublane dim by min/max.
    # lane % 4: 0 -> x1, 1 -> y1, 2 -> x2, 3 -> y2
    coord = jax.lax.broadcasted_iota(jnp.int32, (1, LANES), 1) % 4
    lo = jnp.where(coord < 2, jnp.asarray(0.0, dt), jnp.asarray(-jnp.inf, dt))
    hi = jnp.where(
        coord == 2,
        jnp.asarray(width, dt),
        jnp.where(coord == 3, jnp.asarray(height, dt), jnp.asarray(jnp.inf, dt)),
    )
    o_ref[...] = jnp.minimum(jnp.maximum(x, lo), hi)


def clip_boxes(boxes, img):
    """Functional equivalent of ClipBoxes.forward(boxes, img)."""
    _, _, height, width = img.shape
    B, N, D = boxes.shape
    assert D % 4 == 0, "last dim must be a multiple of 4 (x1,y1,x2,y2 groups)"
    # TODO(synk): support bf16/fp16 boxes (needs (16/32, 128) sublane tiling).
    assert boxes.dtype == jnp.float32, "kernel tiling assumes float32 boxes"

    total = B * N * D
    rows = pl.cdiv(total, LANES)              # static Python int
    padded_total = rows * LANES
    needs_pad = padded_total != total

    # Tile selection: >=2 grid steps whenever possible (v7x 2-TC sharding via
    # "parallel"), capped at MAX_TILE_ROWS; partial edge block handled by Pallas.
    if rows <= 8:
        tile_rows = rows                      # single full-array block
    else:
        tile_rows = max(8, min(MAX_TILE_ROWS, _round_up(pl.cdiv(rows, 2), 8)))
    grid = pl.cdiv(rows, tile_rows)

    flat = boxes.reshape(-1)
    if needs_pad:
        flat = jnp.pad(flat, (0, padded_total - total))
    flat2d = flat.reshape(rows, LANES)        # lane-dense; zero-copy when no pad

    kernel = functools.partial(
        clip_boxes_kernel, width=float(width), height=float(height)
    )

    out2d = pl.pallas_call(
        kernel,
        out_shape=jax.ShapeDtypeStruct((rows, LANES), flat2d.dtype),
        grid=(grid,),
        in_specs=[pl.BlockSpec((tile_rows, LANES), lambda i: (i, 0))],
        out_specs=pl.BlockSpec((tile_rows, LANES), lambda i: (i, 0)),
        compiler_params=pltpu.CompilerParams(
            dimension_semantics=("parallel",)
        ),
        cost_estimate=pl.CostEstimate(
            flops=2 * padded_total,
            transcendentals=0,
            bytes_accessed=8 * padded_total,
        ),
    )(flat2d)

    if needs_pad:
        return out2d.reshape(-1)[:total].reshape(B, N, D)
    return out2d.reshape(B, N, D)             # zero-copy fast path


if __name__ == "__main__":
    key = jax.random.PRNGKey(0)
    k_boxes, k_img = jax.random.split(key)

    B, C, H, W = 2, 4, 16, 16
    num_boxes = 8

    # Boxes deliberately spill outside [0, W] x [0, H] so clipping is exercised.
    boxes = jax.random.uniform(
        k_boxes, (B, num_boxes, 4), dtype=jnp.float32, minval=-8.0, maxval=24.0
    )
    img = jax.random.normal(k_img, (B, C, H, W), dtype=jnp.float32)

    out = jax.jit(clip_boxes)(boxes, img)
    out = jax.block_until_ready(out)

    # Pure-JAX reference mirroring the PyTorch in-place slicing semantics.
    ref = boxes
    ref = ref.at[:, :, 0::4].set(jnp.maximum(ref[:, :, 0::4], 0.0))
    ref = ref.at[:, :, 1::4].set(jnp.maximum(ref[:, :, 1::4], 0.0))
    ref = ref.at[:, :, 2::4].set(jnp.minimum(ref[:, :, 2::4], float(W)))
    ref = ref.at[:, :, 3::4].set(jnp.minimum(ref[:, :, 3::4], float(H)))

    assert out.shape == boxes.shape and out.dtype == boxes.dtype
    assert jnp.allclose(out, ref), "mismatch vs reference"
    print("KERNEL_OK")
</pallas_src>

<mosaic_0001>
module attributes {stable_mosaic.version = 11 : i64} {
  func.func @clip_boxes_kernel(%arg0: i32, %arg1: memref<1x128xf32, #tpu.memory_space<vmem>>, %arg2: memref<1x128xf32, #tpu.memory_space<vmem>>) attributes {dimension_semantics = [#tpu.dimension_semantics<parallel>], iteration_bounds = array<i64: 1>, scalar_prefetch = 0 : i64, scratch_operands = 0 : i64, tpu.core_type = #tpu.core_type<tc>, window_params = [{transform_indices = @transform_0, window_bounds = array<i64: 1, 128>}, {transform_indices = @transform_1, window_bounds = array<i64: 1, 128>}]} {
    %c0 = arith.constant 0 : index
    %c0_0 = arith.constant 0 : index
    %0 = vector.load %arg1[%c0, %c0_0] : memref<1x128xf32, #tpu.memory_space<vmem>>, vector<1x128xf32>
    %1 = tpu.iota {dimensions = array<i32: 1>} : vector<1x128xi32>
    %c4_i32 = arith.constant 4 : i32
    %c0_i32 = arith.constant 0 : i32
    %2 = arith.cmpi eq, %c4_i32, %c0_i32 : i32
    %c1_i32 = arith.constant 1 : i32
    %3 = arith.select %2, %c1_i32, %c4_i32 : i32
    %4 = vector.broadcast %3 : i32 to vector<1x128xi32>
    %5 = arith.remsi %1, %4 : vector<1x128xi32>
    %c0_i32_1 = arith.constant 0 : i32
    %6 = vector.broadcast %c0_i32_1 : i32 to vector<1x128xi32>
    %7 = arith.cmpi ne, %5, %6 : vector<1x128xi32>
    %c0_i32_2 = arith.constant 0 : i32
    %8 = vector.broadcast %c0_i32_2 : i32 to vector<1x128xi32>
    %9 = arith.cmpi slt, %5, %8 : vector<1x128xi32>
    %c0_i32_3 = arith.constant 0 : i32
    %10 = arith.cmpi slt, %3, %c0_i32_3 : i32
    %11 = vector.broadcast %10 : i1 to vector<1x128xi1>
    %12 = vector.broadcast %11 : vector<1x128xi1> to vector<1x128xi1>
    %13 = arith.xori %9, %12 : vector<1x128xi1>
    %14 = arith.andi %13, %7 : vector<1x128xi1>
    %15 = vector.broadcast %3 : i32 to vector<1x128xi32>
    %16 = arith.addi %5, %15 : vector<1x128xi32>
    %17 = arith.select %14, %16, %5 : vector<1x128xi1>, vector<1x128xi32>
    %c2_i32 = arith.constant 2 : i32
    %18 = vector.broadcast %c2_i32 : i32 to vector<1x128xi32>
    %19 = arith.cmpi slt, %17, %18 : vector<1x128xi32>
    %cst = arith.constant 0.000000e+00 : f32
    %cst_4 = arith.constant 0xFF800000 : f32
    %20 = vector.broadcast %cst : f32 to vector<1x128xf32>
    %21 = vector.broadcast %cst_4 : f32 to vector<1x128xf32>
    %22 = arith.select %19, %20, %21 : vector<1x128xi1>, vector<1x128xf32>
    %c2_i32_5 = arith.constant 2 : i32
    %23 = vector.broadcast %c2_i32_5 : i32 to vector<1x128xi32>
    %24 = arith.cmpi eq, %17, %23 : vector<1x128xi32>
    %c3_i32 = arith.constant 3 : i32
    %25 = vector.broadcast %c3_i32 : i32 to vector<1x128xi32>
    %26 = arith.cmpi eq, %17, %25 : vector<1x128xi32>
    %cst_6 = arith.constant 1.600000e+01 : f32
    %cst_7 = arith.constant 0x7F800000 : f32
    %27 = vector.broadcast %cst_6 : f32 to vector<1x128xf32>
    %28 = vector.broadcast %cst_7 : f32 to vector<1x128xf32>
    %29 = arith.select %26, %27, %28 : vector<1x128xi1>, vector<1x128xf32>
    %cst_8 = arith.constant 1.600000e+01 : f32
    %30 = vector.broadcast %cst_8 : f32 to vector<1x128xf32>
    %31 = arith.select %24, %30, %29 : vector<1x128xi1>, vector<1x128xf32>
    %32 = arith.maximumf %0, %22 : vector<1x128xf32>
    %33 = arith.minimumf %32, %31 : vector<1x128xf32>
    %c0_9 = arith.constant 0 : index
    %c0_10 = arith.constant 0 : index
    %34 = vector.load %arg2[%c0_9, %c0_10] : memref<1x128xf32, #tpu.memory_space<vmem>>, vector<1x128xf32>
    tpu.vector_store %arg2[%c0_9, %c0_10], %33 {strides = array<i32>} : memref<1x128xf32, #tpu.memory_space<vmem>>, vector<1x128xf32>,
    return
  }
  func.func @transform_0(%arg0: i32) -> (i32, i32) {
    %c0_i32 = arith.constant 0 : i32
    %c0_i32_0 = arith.constant 0 : i32
    return %arg0, %c0_i32 : i32, i32
  }
  func.func @transform_1(%arg0: i32) -> (i32, i32) {
    %c0_i32 = arith.constant 0 : i32
    %c0_i32_0 = arith.constant 0 : i32
    return %arg0, %c0_i32 : i32, i32
  }
}

</mosaic_0001>

<bundles_post_ra>
// kernel: clip_boxes.1
= control target key start
LH: loop header
LB: loop body
LE: loop exit
PB: predicated region body
PF: predicated region fallthrough
CT: control target
= control target key end

     0   :  { %v9_v0 = vlaneseq  ;;  %v38_v4 = vmov -inf   ;;  %v39_v6 = vmov inf   ;;  %s56_s0 = inlined_call_operand.vmem [shape: f32[1,128], index: 0, kind: input, shape index: {}]   ;;  %s57_s1 = inlined_call_operand.vmem [shape: f32[1,128], index: 1, kind: output, shape index: {}]  }
   0x1   :  { %v8_v3 = vld [vmem:[%s56_s0] sm:$0x1] }
   0x2   :  { %v10_v1 = vand.u32 127, %v9_v0 }
   0x4   :  { %v15_v2 = vand.u32 3, %v10_v1 }
   0x6   :  { %vm23_vm0 = vcmp.lt.s32.totalorder %v15_v2, 2  ;;  %vm25_vm1 = vcmp.eq.s32.totalorder %v15_v2, 2  ;;  %vm26_vm2 = vcmp.eq.s32.totalorder %v15_v2, 3 }
   0x7   :  { %v24_v5 = vsel %vm23_vm0, 0.0, %v38_v4  ;;  %v27_v7 = vsel %vm26_vm2, 16.0, %v39_v6 }
   0x8   :  { %v28_v8 = vsel %vm25_vm1, 16.0, %v27_v7  ;;  %v29_v9 = vmax.f32 %v8_v3, %v24_v5 }
   0xa   :  { %v30_v10 = vmin.f32 %v29_v9, %v28_v8 }
   0xc   :  { %31 = vst [vmem:[%s57_s1] sm:$0x1] %v30_v10 }

</bundles_post_ra>
